<compile_context>
chip_gen: v5e
topology: v5e:2x2
jax: 0.10.0
libtpu: 0.0.40
codegen_flags: <defaults>
</compile_context>

<pallas_src>
import numpy as np

import jax
import jax.numpy as jnp
from jax import lax
from jax.experimental import pallas as pl
from jax.experimental.pallas import tpu as pltpu


def _round_up(x, m):
    return (x + m - 1) // m * m


def _inclusive_lane_scan(x):
    """Inclusive prefix sum along the last (lane) axis.

    Hillis-Steele log-step scan: each step is one XLU lane-rotate
    (pltpu.roll) plus a masked VPU add, so a TM-wide scan costs
    ceil(log2(TM)) cheap vector ops instead of a (TM, TM) MXU matmul.
    """
    n = x.shape[-1]
    lane = lax.broadcasted_iota(jnp.int32, x.shape, x.ndim - 1)
    acc = x
    shift = 1
    while shift < n:
        rolled = pltpu.roll(acc, shift, axis=x.ndim - 1)
        acc = acc + jnp.where(lane >= shift, rolled, jnp.zeros_like(rolled))
        shift *= 2
    return acc


def _similarity_head_kernel(clf_ref,     # (1,)          int32  SMEM
                            start_ref,   # (num_splits,) int32  SMEM
                            tok_ref,     # (1, TM)       int32  VMEM
                            h_ref,       # (TM, D)       native VMEM (streamed)
                            w_ref,       # (1, D)        f32    VMEM
                            out_ref,     # (1, 1, D)     f32    VMEM (resident acc)
                            count_ref):  # (1, 1)        f32    VMEM scratch
    s = pl.program_id(0)   # split (parallel across TensorCores on v7x)
    t = pl.program_id(1)   # tile within the split (sequential reduction)

    @pl.when(t == 0)
    def _init():
        out_ref[...] = jnp.zeros_like(out_ref)
        # starting selected-row count of this split (precomputed in wrapper)
        count_ref[...] = jnp.full((1, 1), start_ref[s], dtype=jnp.float32)

    tm = tok_ref.shape[1]
    d = h_ref.shape[1]
    clf = clf_ref[0]

    mask = (tok_ref[...] == clf).astype(jnp.float32)              # (1, TM)
    prev = count_ref[...]                                          # (1, 1)

    # rank[j] = number of selected rows strictly before row j (global order).
    incl = _inclusive_lane_scan(mask)                              # (1, TM)
    rank = (incl - mask + prev).astype(jnp.int32)                  # (1, TM)

    # Gather w[rank] with a one-hot M=1 matmul:  (1,D) @ (D,TM) -> (1,TM).
    # Rows with rank >= D get an all-zero one-hot (silently dropped, see TODO).
    feat = lax.broadcasted_iota(jnp.int32, (d, tm), 0)             # (D, TM)
    onehot = (feat == rank).astype(jnp.float32)                    # (D, TM)
    w_gath = jnp.dot(w_ref[...], onehot,
                     preferred_element_type=jnp.float32)           # (1, TM)

    coeff = (mask * w_gath).astype(h_ref.dtype)                    # (1, TM)

    # Tile contribution: coeff(1,TM) @ h(TM,D) -> (1,D), accumulated in the
    # VMEM-resident output block.  Sum over D + bias happen in the wrapper.
    contrib = jnp.dot(coeff, h_ref[...],
                      preferred_element_type=jnp.float32)          # (1, D)
    out_ref[...] += contrib.reshape(1, 1, d)

    # carry the selected-row count to the next tile (f32, exact to 2**24 rows)
    count_ref[...] = prev + jnp.sum(mask, axis=1, keepdims=True)


def similarity_head_forward(h, x, weight, bias, clf_token, n_embd, *,
                            block_rows=1024, num_splits=2):
    """out = Linear(n_embd,1)( sum_dim1( h.view(-1,D)[x[...,0].view(-1)==clf] ) )."""
    d = n_embd
    sim_h = h.reshape(-1, d)                        # native dtype, no up-cast
    flat = x[..., 0].reshape(-1).astype(jnp.int32)
    n = sim_h.shape[0]

    # Row tile: multiple of 128 -> lane-dense (1, TM) token blocks and a
    # sublane-aligned (TM, D) h block for f32/bf16/int8 packing alike.
    tm = _round_up(min(block_rows, max(n, 1)), 128)
    tiles_total = -(-n // tm)
    num_splits = max(1, min(int(num_splits), tiles_total))
    tiles_per_split = -(-tiles_total // num_splits)
    n_pad = num_splits * tiles_per_split * tm
    pad = n_pad - n
    if pad:
        # sentinel token != clf_token and zero rows -> padded lanes never select
        flat = jnp.concatenate(
            [flat, jnp.full((pad,), clf_token + 1, dtype=jnp.int32)])
        sim_h = jnp.concatenate(
            [sim_h, jnp.zeros((pad, d), dtype=sim_h.dtype)], axis=0)

    tok_row = flat.reshape(1, n_pad)
    w_row = weight.reshape(1, d).astype(jnp.float32)
    clf_arr = jnp.asarray([clf_token], dtype=jnp.int32)

    # Exclusive per-split starting count of selected rows: a cheap O(N) int
    # reduction over token ids only (lets the splits run independently and,
    # on v7x, in parallel on both TensorCores).
    sel = (flat == clf_token).astype(jnp.int32)
    per_split = jnp.sum(sel.reshape(num_splits, tiles_per_split * tm), axis=1)
    start_counts = (jnp.cumsum(per_split) - per_split).astype(jnp.int32)

    T = tiles_per_split
    partials = pl.pallas_call(
        _similarity_head_kernel,
        out_shape=jax.ShapeDtypeStruct((num_splits, 1, d), jnp.float32),
        grid=(num_splits, tiles_per_split),
        in_specs=[
            pl.BlockSpec(memory_space=pltpu.MemorySpace.SMEM),        # clf token id
            pl.BlockSpec(memory_space=pltpu.MemorySpace.SMEM),        # split start counts
            pl.BlockSpec((1, tm), lambda s, t, T=T: (0, s * T + t)),  # token row tile
            pl.BlockSpec((tm, d), lambda s, t, T=T: (s * T + t, 0)),  # h tile (streamed)
            pl.BlockSpec((1, d), lambda s, t: (0, 0)),                # weight row
        ],
        out_specs=pl.BlockSpec((1, 1, d), lambda s, t: (s, 0, 0)),
        scratch_shapes=[pltpu.VMEM((1, 1), jnp.float32)],             # selected-count carry
        compiler_params=pltpu.CompilerParams(
            dimension_semantics=("parallel", "arbitrary"),
            vmem_limit_bytes=32 * 1024 * 1024,
        ),
    )(clf_arr, start_counts, tok_row, sim_h, w_row)

    out = jnp.sum(partials) + bias.reshape(()).astype(jnp.float32)
    return out.reshape(1)


if __name__ == "__main__":
    key = jax.random.PRNGKey(0)
    B, S, n_embd = 8, 60, 32
    clf_token = 7

    k_h, k_tok, k_w, k_b = jax.random.split(key, 4)
    h = jax.random.normal(k_h, (B, S, n_embd), dtype=jnp.float32)

    # token ids in [0, clf_token); place the classifier token at every 15th
    # flattened position so the number of selected rows (480/15 = 32) equals
    # n_embd, which the module's Linear(n_embd, 1) on the summed vector needs.
    N = B * S
    tokens = jax.random.randint(k_tok, (N,), 0, clf_token)
    tokens = tokens.at[::15].set(clf_token)
    positions = jnp.arange(N, dtype=jnp.int32)
    x = jnp.stack([tokens, positions], axis=-1).reshape(B, S, 2)

    # deterministic parameter init mirroring the torch module:
    #   nn.init.normal_(weight, std=0.02); nn.init.normal_(bias, 0)
    weight = 0.02 * jax.random.normal(k_w, (1, n_embd), dtype=jnp.float32)
    bias = jax.random.normal(k_b, (1,), dtype=jnp.float32)

    # block_rows=128 -> TM=128, 4 tiles, 2 splits: exercises the cross-tile
    # rank/count carry, the cross-split start counts, and tail padding 480->512.
    out = similarity_head_forward(h, x, weight, bias, clf_token, n_embd,
                                  block_rows=128)
    out = jax.block_until_ready(out)

    # pure-JAX reference (eval-mode dropout == identity)
    sim_h_ref = h.reshape(-1, n_embd)
    flat_ref = x[..., 0].reshape(-1)
    sel_rows = sim_h_ref[flat_ref == clf_token]     # (n_embd, n_embd)
    v = sel_rows.sum(axis=1)                        # (n_embd,)
    ref = (weight[0] @ v + bias[0]).reshape(1)

    assert out.shape == (1,)
    np.testing.assert_allclose(np.asarray(out), np.asarray(ref),
                               rtol=1e-5, atol=1e-4)
    print("KERNEL_OK")
</pallas_src>

<mosaic_0001>
module attributes {stable_mosaic.version = 11 : i64} {
  func.func @_similarity_head_kernel(%arg0: i32, %arg1: i32, %arg2: memref<1xi32, #tpu.memory_space<smem>>, %arg3: memref<2xi32, #tpu.memory_space<smem>>, %arg4: memref<1x128xi32, #tpu.memory_space<vmem>>, %arg5: memref<128x32xf32, #tpu.memory_space<vmem>>, %arg6: memref<1x32xf32, #tpu.memory_space<vmem>>, %arg7: memref<1x1x32xf32, #tpu.memory_space<vmem>>, %arg8: memref<1x1xf32, #tpu.memory_space<vmem>>) attributes {dimension_semantics = [#tpu.dimension_semantics<parallel>, #tpu.dimension_semantics<arbitrary>], iteration_bounds = array<i64: 2, 2>, scalar_prefetch = 0 : i64, scratch_operands = 1 : i64, tpu.core_type = #tpu.core_type<tc>, window_params = [{transform_indices = @transform_0, window_bounds = array<i64: 1>}, {transform_indices = @transform_1, window_bounds = array<i64: 2>}, {transform_indices = @transform_2, window_bounds = array<i64: 1, 128>}, {transform_indices = @transform_3, window_bounds = array<i64: 128, 32>}, {pipeline_mode = #tpu.pipeline_mode<synchronous>, transform_indices = @transform_4, window_bounds = array<i64: 1, 32>}, {transform_indices = @transform_5, window_bounds = array<i64: 1, 1, 32>}]} {
    %c0_i32 = arith.constant 0 : i32
    %0 = arith.cmpi eq, %arg1, %c0_i32 : i32
    %1 = arith.extui %0 : i1 to i32
    %c0_i32_0 = arith.constant 0 : i32
    %2 = arith.cmpi ne, %1, %c0_i32_0 : i32
    scf.if %2 {
      %cst_33 = arith.constant 0.000000e+00 : f32
      %75 = vector.broadcast %cst_33 : f32 to vector<1x1x32xf32>
      %c0_34 = arith.constant 0 : index
      %c0_35 = arith.constant 0 : index
      %c0_36 = arith.constant 0 : index
      %76 = vector.load %arg7[%c0_34, %c0_35, %c0_36] : memref<1x1x32xf32, #tpu.memory_space<vmem>>, vector<1x1x32xf32>
      tpu.vector_store %arg7[%c0_34, %c0_35, %c0_36], %75 {strides = array<i32>} : memref<1x1x32xf32, #tpu.memory_space<vmem>>, vector<1x1x32xf32>,
      %77 = arith.index_cast %arg0 : i32 to index
      %78 = memref.load %arg3[%77] : memref<2xi32, #tpu.memory_space<smem>>
      %79 = arith.sitofp %78 : i32 to f32
      %80 = vector.broadcast %79 : f32 to vector<1x1xf32>
      %c0_37 = arith.constant 0 : index
      %c0_38 = arith.constant 0 : index
      %81 = vector.load %arg8[%c0_37, %c0_38] : memref<1x1xf32, #tpu.memory_space<vmem>>, vector<1x1xf32>
      tpu.vector_store %arg8[%c0_37, %c0_38], %80 {strides = array<i32>} : memref<1x1xf32, #tpu.memory_space<vmem>>, vector<1x1xf32>,
    } else {
    }
    %c0 = arith.constant 0 : index
    %3 = memref.load %arg2[%c0] : memref<1xi32, #tpu.memory_space<smem>>
    %c0_1 = arith.constant 0 : index
    %c0_2 = arith.constant 0 : index
    %4 = vector.load %arg4[%c0_1, %c0_2] : memref<1x128xi32, #tpu.memory_space<vmem>>, vector<1x128xi32>
    %5 = vector.broadcast %3 : i32 to vector<1x128xi32>
    %6 = arith.cmpi eq, %4, %5 : vector<1x128xi32>
    %7 = arith.extui %6 : vector<1x128xi1> to vector<1x128xi32>
    %8 = arith.sitofp %7 : vector<1x128xi32> to vector<1x128xf32>
    %c0_3 = arith.constant 0 : index
    %c0_4 = arith.constant 0 : index
    %9 = vector.load %arg8[%c0_3, %c0_4] : memref<1x1xf32, #tpu.memory_space<vmem>>, vector<1x1xf32>
    %10 = tpu.iota {dimensions = array<i32: 1>} : vector<1x128xi32>
    %c1_i32 = arith.constant 1 : i32
    %11 = tpu.dynamic_rotate %8 by %c1_i32 dim 1 : vector<1x128xf32>, i32 -> vector<1x128xf32>
    %c1_i32_5 = arith.constant 1 : i32
    %12 = vector.broadcast %c1_i32_5 : i32 to vector<1x128xi32>
    %13 = arith.cmpi sge, %10, %12 : vector<1x128xi32>
    %cst = arith.constant 0.000000e+00 : f32
    %14 = vector.broadcast %cst : f32 to vector<1x128xf32>
    %15 = arith.select %13, %11, %14 : vector<1x128xi1>, vector<1x128xf32>
    %16 = arith.addf %8, %15 : vector<1x128xf32>
    %c2_i32 = arith.constant 2 : i32
    %17 = tpu.dynamic_rotate %16 by %c2_i32 dim 1 : vector<1x128xf32>, i32 -> vector<1x128xf32>
    %c2_i32_6 = arith.constant 2 : i32
    %18 = vector.broadcast %c2_i32_6 : i32 to vector<1x128xi32>
    %19 = arith.cmpi sge, %10, %18 : vector<1x128xi32>
    %cst_7 = arith.constant 0.000000e+00 : f32
    %20 = vector.broadcast %cst_7 : f32 to vector<1x128xf32>
    %21 = arith.select %19, %17, %20 : vector<1x128xi1>, vector<1x128xf32>
    %22 = arith.addf %16, %21 : vector<1x128xf32>
    %c4_i32 = arith.constant 4 : i32
    %23 = tpu.dynamic_rotate %22 by %c4_i32 dim 1 : vector<1x128xf32>, i32 -> vector<1x128xf32>
    %c4_i32_8 = arith.constant 4 : i32
    %24 = vector.broadcast %c4_i32_8 : i32 to vector<1x128xi32>
    %25 = arith.cmpi sge, %10, %24 : vector<1x128xi32>
    %cst_9 = arith.constant 0.000000e+00 : f32
    %26 = vector.broadcast %cst_9 : f32 to vector<1x128xf32>
    %27 = arith.select %25, %23, %26 : vector<1x128xi1>, vector<1x128xf32>
    %28 = arith.addf %22, %27 : vector<1x128xf32>
    %c8_i32 = arith.constant 8 : i32
    %29 = tpu.dynamic_rotate %28 by %c8_i32 dim 1 : vector<1x128xf32>, i32 -> vector<1x128xf32>
    %c8_i32_10 = arith.constant 8 : i32
    %30 = vector.broadcast %c8_i32_10 : i32 to vector<1x128xi32>
    %31 = arith.cmpi sge, %10, %30 : vector<1x128xi32>
    %cst_11 = arith.constant 0.000000e+00 : f32
    %32 = vector.broadcast %cst_11 : f32 to vector<1x128xf32>
    %33 = arith.select %31, %29, %32 : vector<1x128xi1>, vector<1x128xf32>
    %34 = arith.addf %28, %33 : vector<1x128xf32>
    %c16_i32 = arith.constant 16 : i32
    %35 = tpu.dynamic_rotate %34 by %c16_i32 dim 1 : vector<1x128xf32>, i32 -> vector<1x128xf32>
    %c16_i32_12 = arith.constant 16 : i32
    %36 = vector.broadcast %c16_i32_12 : i32 to vector<1x128xi32>
    %37 = arith.cmpi sge, %10, %36 : vector<1x128xi32>
    %cst_13 = arith.constant 0.000000e+00 : f32
    %38 = vector.broadcast %cst_13 : f32 to vector<1x128xf32>
    %39 = arith.select %37, %35, %38 : vector<1x128xi1>, vector<1x128xf32>
    %40 = arith.addf %34, %39 : vector<1x128xf32>
    %c32_i32 = arith.constant 32 : i32
    %41 = tpu.dynamic_rotate %40 by %c32_i32 dim 1 : vector<1x128xf32>, i32 -> vector<1x128xf32>
    %c32_i32_14 = arith.constant 32 : i32
    %42 = vector.broadcast %c32_i32_14 : i32 to vector<1x128xi32>
    %43 = arith.cmpi sge, %10, %42 : vector<1x128xi32>
    %cst_15 = arith.constant 0.000000e+00 : f32
    %44 = vector.broadcast %cst_15 : f32 to vector<1x128xf32>
    %45 = arith.select %43, %41, %44 : vector<1x128xi1>, vector<1x128xf32>
    %46 = arith.addf %40, %45 : vector<1x128xf32>
    %c64_i32 = arith.constant 64 : i32
    %47 = tpu.dynamic_rotate %46 by %c64_i32 dim 1 : vector<1x128xf32>, i32 -> vector<1x128xf32>
    %c64_i32_16 = arith.constant 64 : i32
    %48 = vector.broadcast %c64_i32_16 : i32 to vector<1x128xi32>
    %49 = arith.cmpi sge, %10, %48 : vector<1x128xi32>
    %cst_17 = arith.constant 0.000000e+00 : f32
    %50 = vector.broadcast %cst_17 : f32 to vector<1x128xf32>
    %51 = arith.select %49, %47, %50 : vector<1x128xi1>, vector<1x128xf32>
    %52 = arith.addf %46, %51 : vector<1x128xf32>
    %53 = arith.subf %52, %8 : vector<1x128xf32>
    %54 = vector.broadcast %9 : vector<1x1xf32> to vector<1x128xf32>
    %55 = arith.addf %53, %54 : vector<1x128xf32>
    %56 = arith.fptosi %55 : vector<1x128xf32> to vector<1x128xi32>
    %57 = tpu.iota {dimensions = array<i32: 0>} : vector<32x128xi32>
    %58 = vector.broadcast %56 : vector<1x128xi32> to vector<32x128xi32>
    %59 = arith.cmpi eq, %57, %58 : vector<32x128xi32>
    %60 = arith.extui %59 : vector<32x128xi1> to vector<32x128xi32>
    %61 = arith.sitofp %60 : vector<32x128xi32> to vector<32x128xf32>
    %c0_18 = arith.constant 0 : index
    %c0_19 = arith.constant 0 : index
    %62 = vector.load %arg6[%c0_18, %c0_19] : memref<1x32xf32, #tpu.memory_space<vmem>>, vector<1x32xf32>
    %cst_20 = arith.constant dense<0.000000e+00> : vector<1x128xf32>
    %63 = tpu.matmul %62, %61, %cst_20 {dimension_numbers = #tpu.dot_dimension_numbers<[1], [0], [0], [1], [0, 0, 1, 1], [], []>} : vector<1x32xf32>, vector<32x128xf32>, vector<1x128xf32> -> vector<1x128xf32>
    %64 = arith.mulf %8, %63 : vector<1x128xf32>
    %c0_21 = arith.constant 0 : index
    %c0_22 = arith.constant 0 : index
    %65 = vector.load %arg5[%c0_21, %c0_22] : memref<128x32xf32, #tpu.memory_space<vmem>>, vector<128x32xf32>
    %cst_23 = arith.constant dense<0.000000e+00> : vector<1x32xf32>
    %66 = tpu.matmul %64, %65, %cst_23 {dimension_numbers = #tpu.dot_dimension_numbers<[1], [0], [0], [1], [0, 0, 1, 1], [], []>} : vector<1x128xf32>, vector<128x32xf32>, vector<1x32xf32> -> vector<1x32xf32>
    %c0_24 = arith.constant 0 : index
    %c0_25 = arith.constant 0 : index
    %c0_26 = arith.constant 0 : index
    %67 = vector.load %arg7[%c0_24, %c0_25, %c0_26] : memref<1x1x32xf32, #tpu.memory_space<vmem>>, vector<1x1x32xf32>
    %68 = vector.shape_cast %66 : vector<1x32xf32> to vector<1x1x32xf32>
    %69 = arith.addf %67, %68 : vector<1x1x32xf32>
    %c0_27 = arith.constant 0 : index
    %c0_28 = arith.constant 0 : index
    %c0_29 = arith.constant 0 : index
    %70 = vector.load %arg7[%c0_27, %c0_28, %c0_29] : memref<1x1x32xf32, #tpu.memory_space<vmem>>, vector<1x1x32xf32>
    tpu.vector_store %arg7[%c0_27, %c0_28, %c0_29], %69 {strides = array<i32>} : memref<1x1x32xf32, #tpu.memory_space<vmem>>, vector<1x1x32xf32>,
    %cst_30 = arith.constant dense<0.000000e+00> : vector<1xf32>
    %71 = vector.multi_reduction <add>, %8, %cst_30 [1] : vector<1x128xf32> to vector<1xf32>
    %72 = vector.shape_cast %71 : vector<1xf32> to vector<1x1xf32>
    %73 = arith.addf %9, %72 : vector<1x1xf32>
    %c0_31 = arith.constant 0 : index
    %c0_32 = arith.constant 0 : index
    %74 = vector.load %arg8[%c0_31, %c0_32] : memref<1x1xf32, #tpu.memory_space<vmem>>, vector<1x1xf32>
    tpu.vector_store %arg8[%c0_31, %c0_32], %73 {strides = array<i32>} : memref<1x1xf32, #tpu.memory_space<vmem>>, vector<1x1xf32>,
    return
  }
  func.func @transform_0(%arg0: i32, %arg1: i32) -> i32 {
    %c0_i32 = arith.constant 0 : i32
    %c0_i32_0 = arith.constant 0 : i32
    return %c0_i32 : i32
  }
  func.func @transform_1(%arg0: i32, %arg1: i32) -> i32 {
    %c0_i32 = arith.constant 0 : i32
    %c0_i32_0 = arith.constant 0 : i32
    return %c0_i32 : i32
  }
  func.func @transform_2(%arg0: i32, %arg1: i32) -> (i32, i32) {
    %c2_i32 = arith.constant 2 : i32
    %0 = arith.muli %arg0, %c2_i32 : i32
    %1 = arith.addi %0, %arg1 : i32
    %c0_i32 = arith.constant 0 : i32
    %c0_i32_0 = arith.constant 0 : i32
    return %c0_i32, %1 : i32, i32
  }
  func.func @transform_3(%arg0: i32, %arg1: i32) -> (i32, i32) {
    %c2_i32 = arith.constant 2 : i32
    %0 = arith.muli %arg0, %c2_i32 : i32
    %1 = arith.addi %0, %arg1 : i32
    %c0_i32 = arith.constant 0 : i32
    %c0_i32_0 = arith.constant 0 : i32
    return %1, %c0_i32 : i32, i32
  }
  func.func @transform_4(%arg0: i32, %arg1: i32) -> (i32, i32) {
    %c0_i32 = arith.constant 0 : i32
    %c0_i32_0 = arith.constant 0 : i32
    %c0_i32_1 = arith.constant 0 : i32
    return %c0_i32, %c0_i32_0 : i32, i32
  }
  func.func @transform_5(%arg0: i32, %arg1: i32) -> (i32, i32, i32) {
    %c0_i32 = arith.constant 0 : i32
    %c0_i32_0 = arith.constant 0 : i32
    %c0_i32_1 = arith.constant 0 : i32
    return %arg0, %c0_i32, %c0_i32_0 : i32, i32, i32
  }
}

</mosaic_0001>

<bundles_post_ra>
// kernel: tpu_custom_call.1
= control target key start
LH: loop header
LB: loop body
LE: loop exit
PB: predicated region body
PF: predicated region fallthrough
CT: control target
= control target key end

     0   :  { %s1005_s0 = inlined_call_operand.<no memory space> [shape: s32[1], index: 0, kind: input, shape index: {}]   ;;  %s1006_s1 = inlined_call_operand.vmem [shape: s32[2], index: 1, kind: input, shape index: {}]   ;;  %s1007_s2 = inlined_call_operand.vmem [shape: s32[1,512], index: 2, kind: input, shape index: {}]   ;;  %s1008_s3 = inlined_call_operand.vmem [shape: f32[512,32], index: 3, kind: input, shape index: {}]   ;;  %s1009_s4 = inlined_call_operand.vmem [shape: f32[1,32], index: 4, kind: input, shape index: {}]   ;;  %s1010_s5 = inlined_call_operand.hbm [shape: f32[2,1,32], index: 5, kind: output, shape index: {}]  }
   0x1   :  { %10 = sst [smem:[#allocation3]] %s1005_s0 }
   0x2   :  { %11 = vsyncpa [#allocation6], 0 }
   0x3   :  { %12 = vsyncpa [#allocation5], 0 }
   0x4   :  { %14 = vsyncpa [#allocation5 + $0x1], 0  ;;  %s836_s20 = smov 0   ;;  %s838_s21 = smov 0  }
   0x5   :  { %s840_s22 = smov 0   ;;  %s842_s23 = smov 0  }
   0x6   :  { %s844_s24 = smov 0   ;;  %s846_s25 = smov 0  }
   0x7   :  { %s848_s26 = smov 0   ;;  %s850_s27 = smov 0  }
   0x8 LB: > { %s548_s0 = sadd.s32 4294967295, %s789_s27   ;;  %s549_s28 = sadd.s32 4294967294, %s789_s27   ;;  %s789_s27 = sphi %s850_s27, %s20_s27   ;;  %s785_s26 = sphi %s848_s26, %s1019_s26   ;;  %s781_s25 = sphi %s846_s25, %s1018_s25   ;;  %s777_s24 = sphi %s844_s24, %s1017_s24   ;;  %s773_s23 = sphi %s842_s23, %s1016_s23   ;;  %s769_s22 = sphi %s840_s22, %s1015_s22   ;;  %s765_s21 = sphi %s838_s21, %s1014_s21   ;;  %s761_s20 = sphi %s836_s20, %s1013_s20  }
   0x9   : > { %s29_s29 = sadd.s32 1, %s781_s25  ;;  %s32_s30 = sadd.s32 1, %s785_s26 }
   0xa   : > { %p30_p0 = scmp.ge.s32.totalorder %s29_s29, 2  ;;  %s162_s6 = sadd.s32 1, %s769_s22 }
   0xb   : > { %p172_p1 = scmp.ne.s32.totalorder %s769_s22, %s765_s21  ;;  %p173_p2 = scmp.eq.s32.totalorder %s548_s0, 3 }
   0xc   : > { %s1021_s29 = smov (%p30_p0, %s29_s29), 0  ;;  %s1023_s30 = smov (!%p30_p0, %s32_s30), %s785_s26 }
   0xd   : > { %p886_p3 = por %p173_p2, %p172_p1  ;;  %p178_p4 = scmp.ne.s32.totalorder %s765_s21, %s761_s20 }
   0xe   : > { %p34_p5 = scmp.ge.s32.totalorder %s1023_s30, 2  ;;  %p179_p6 = scmp.eq.s32.totalorder %s549_s28, 3 }
   0xf   : > { %p554_p7 = scmp.ge.s32.totalorder %s789_s27, 1  ;;  %p186_p8 = scmp.lt.s32.totalorder %s789_s27, 5 }
  0x10   : > { %s1025_s30 = smov (%p34_p5, %s1023_s30), 0  ;;  %p896_p9 = por %p179_p6, %p178_p4 }
  0x11   : > { %p187_p10 = pnand %p554_p7, %p186_p8  ;;  %s159_s9 = ssub.s32 %s785_s26, %s1025_s30 }
  0x12   : > { %p160_p11 = scmp.eq.s32.totalorder %s159_s9, 0  ;;  %p595_p13 = scmp.eq.s32.totalorder %s548_s0, 0 }
  0x13   : > { %p587_p12 = pneg %p187_p10  ;;  %s201_s12 = sshll.u32 %s1006_s1, 4  ;;  %s202_s12 = int_to_ptr.vmem [resolvable:$true] %s201_s12 }
  0x14   : > { %s906_s13 = scalar_select %p160_p11, %s769_s22, %s162_s6  }
  0x15   : > { %p588_p0 = pnand %p595_p13, %p587_p12  ;;  %s791_s14 = smov [#allocation4]  }
  0x16   : > { %240 = sbr.rel (%p187_p10) target bundleno = 1109 (0x455), region = 40 }
  0x17   : > { %590 = dma.vmem_to_smem (!%p588_p0), %s202_s12, 16, %s791_s14, [#allocation6]  }
  0x1b   : > { %752 = dma.done.wait (%p595_p13), [#allocation6], 16  }
  0x1c   : > { %754 = vsyncadd (%p595_p13), [#allocation6], 4294967280 }
  0x1d   : > { %247 = sfence }
  0x1e   : > { %s274_s15 = sand.u32 1, %s765_s21   ;;  %s559_s16 = sshll.u32 %s777_s24, 1 }
  0x1f   : > { %s277_s17 = sadd.s32 %s773_s23, %s559_s16  ;;  %s921_s12 = scalar_lea.vmem [#allocation7], %s274_s15 }
  0x20   : > { %p278_p1 = scmp.lt.s32.totalorder %s277_s17, 3  ;;  %s561_s18 = sshll.u32 %s277_s17, 4 }
  0x21   : > { %p286_p2 = scmp.lt.s32.totalorder %s561_s18, 63  ;;  %p563_p4 = scmp.ne.s32.totalorder %s773_s23, 0 }
  0x22   : > { %s1027_s17 = smov (!%p278_p1, %s277_s17), 3  ;;  %s299_s14 = sld [smem:[#allocation4 + %s777_s24]] (!%p563_p4) }
  0x23   : > { %s1029_s18 = smov (!%p286_p2, %s561_s18), 63  ;;  %s280_s28 = scalar_lea.vmem %s1007_s2, %s1027_s17 }
  0x24   : > { %s562_s6 = sshll.u32 %s1029_s18, 3  ;;  %296 = sbr.rel (%p563_p4) target bundleno = 44 (0x2c), region = 48 }
  0x25   : > { %s917_s11 = scalar_lea.vmem %s1008_s3, %s562_s6 }
  0x28   : > { %s300_s16 = scvt.s32.f32 (!%p563_p4), %s299_s14 }
  0x29   : > { %vm297_vm0 = vcmask 253952   ;;  %v792_v0 = vmov 0.0   ;;  %vm302_vm1 = vcmask 0  }
  0x2a   : > { %298 = vst.msk [vmem:[%s921_s12] sm:$0x1] %vm297_vm0, %v792_v0  ;;  %v301_v1 = vstv %s300_s16 }
  0x2b   : > { %303 = vst.msk [vmem:[#allocation2] sm:$0x1] %vm302_vm1, %v301_v1 }
  0x2c PF: > { %s304_s17 = sld [smem:[#allocation3]]  ;;  %v305_v2 = vld [vmem:[%s280_s28] sm:$0x1]  ;;  %v793_v4 = vmov 0.0   ;;  %s794_s23 = smov 1   ;;  %v311_v6 = vlaneseq  ;;  %v800_v24 = vmov 0  }
  0x2d   : > { %s795_s18 = smov 2   ;;  %s796_s19 = smov 4   ;;  %674 = vset.pattern.permute.xlu1 %v800_v24  ;;  %675 = vset.pattern.permute.xlu0 %v800_v24  ;;  %v416_v28 = vld [vmem:[%s917_s11 + $0x78] sm:$0xff]  ;;  %v415_v29 = vld [vmem:[%s917_s11 + $0x70] sm:$0xff]  ;;  %v414_v30 = vld [vmem:[%s917_s11 + $0x68] sm:$0xff]  ;;  %v802_v58 = vmov 1.0  }
  0x2e   : > { %v312_v7 = vand.u32 127, %v311_v6  ;;  %s797_s0 = smov 8   ;;  %s798_s28 = smov 16   ;;  %417 = vmatpush.msra.mxu1 %v416_v28  ;;  %v413_v31 = vld [vmem:[%s917_s11 + $0x60] sm:$0xff]  ;;  %v412_v32 = vld [vmem:[%s917_s11 + $0x58] sm:$0xff]  ;;  %v411_v34 = vld [vmem:[%s917_s11 + $0x50] sm:$0xff] }
  0x2f   : > { %s799_s6 = smov 32   ;;  %s801_s9 = smov 64   ;;  %v410_v37 = vld [vmem:[%s917_s11 + $0x48] sm:$0xff]  ;;  %v409_v40 = vld [vmem:[%s917_s11 + $0x40] sm:$0xff]  ;;  %v408_v42 = vld [vmem:[%s917_s11 + $0x38] sm:$0xff]  ;;  %v358_v44 = vshrl.u32 %v311_v6, 7 }
  0x30   : > { %vm315_vm3 = vcmp.ge.s32.totalorder %v312_v7, 1  ;;  %vm320_vm4 = vcmp.ge.s32.totalorder %v312_v7, 2  ;;  %vm325_vm5 = vcmp.ge.s32.totalorder %v312_v7, 4  ;;  %vm330_vm6 = vcmp.ge.s32.totalorder %v312_v7, 8  ;;  %418 = vmatpush.msra.mxu1 %v415_v29  ;;  %v407_v45 = vld [vmem:[%s917_s11 + $0x30] sm:$0xff]  ;;  %v406_v48 = vld [vmem:[%s917_s11 + $0x28] sm:$0xff] }
  0x31   : > { %vm335_vm7 = vcmp.ge.s32.totalorder %v312_v7, 16  ;;  %vm340_vm8 = vcmp.ge.s32.totalorder %v312_v7, 32  ;;  %vm345_vm9 = vcmp.ge.s32.totalorder %v312_v7, 64  ;;  %v361_v51 = vadd.s32 24, %v358_v44  ;;  %v405_v52 = vld [vmem:[%s917_s11 + $0x20] sm:$0xff]  ;;  %v404_v55 = vld [vmem:[%s917_s11 + $0x18] sm:$0xff] }
  0x32   : > { %v306_v3 = vstv %s304_s17  ;;  %v931_v23 = vld [vmem:[#allocation2] sm:$0x1]  ;;  %419 = vmatpush.msra.mxu1 %v414_v30  ;;  %v360_v54 = vadd.s32 16, %v358_v44  ;;  %v359_v56 = vadd.s32 8, %v358_v44  ;;  %v403_v57 = vld [vmem:[%s917_s11 + $0x10] sm:$0xff]  ;;  %vm376_vm14 = vcmask 261120  }
  0x33   : > { %vm307_vm2 = vcmp.eq.s32.totalorder %v305_v2, %v306_v3  ;;  %v375_v59 = vld [vmem:[%s1009_s4] sm:$0x1]  ;;  %v402_v60 = vld [vmem:[%s917_s11 + $0x8] sm:$0xff]  ;;  %vm441_vm0 = vcmask 1040384   ;;  %vm446_vm1 = vcmask 0  }
  0x34   : > { %v926_v5 = vsel %vm307_vm2, 1.0, %v793_v4  ;;  %420 = vmatpush.msra.mxu1 %v413_v31  ;;  %v401_v61 = vld [vmem:[%s917_s11] sm:$0xff]  ;;  %s457_s11 = scalar_lea.hbm %s1010_s5, %s777_s24  ;;  %vm439_vm2 = vcmask 253952  }
  0x35   : > { %313 = vrot.lane.b32.xlu0 %v926_v5, %s794_s23  ;;  %v442_v62 = vsel %vm441_vm0, %v926_v5, 0.0  ;;  %v437_v3 = vld [vmem:[%s921_s12] sm:$0x1]  ;;  %s459_s23 = sshll.u32 %s921_s12, 4  ;;  %s460_s23 = int_to_ptr.vmem [resolvable:$true] %s459_s23 }
  0x36   : > { %421 = vmatpush.msra.mxu1 %v412_v32 }
  0x38   : > { %422 = vmatpush.msra.mxu1 %v411_v34 }
  0x3a   : > { %423 = vmatpush.msra.mxu1 %v410_v37 }
  0x3c   : > { %424 = vmatpush.msra.mxu1 %v409_v40 }
  0x3e   : > { %425 = vmatpush.msra.mxu1 %v408_v42 }
  0x40   : > { %426 = vmatpush.msra.mxu1 %v407_v45 }
  0x42   : > { %427 = vmatpush.msra.mxu1 %v406_v48 }
  0x44   : > { %428 = vmatpush.msra.mxu1 %v405_v52 }
  0x46   : > { %429 = vmatpush.msra.mxu1 %v404_v55 }
  0x48   : > { %430 = vmatpush.msra.mxu1 %v403_v57 }
  0x4a   : > { %431 = vmatpush.msra.mxu1 %v402_v60 }
  0x4c   : > { %432 = vmatpush.msra.mxu1 %v401_v61 }
  0xa7   : > { %v314_v8 = vpop.permute.xlu0 %313 }
  0xa8   : > { %v316_v9 = vsel %vm315_vm3, %v314_v8, 0.0 }
  0xa9   : > { %v317_v10 = vadd.f32 %v926_v5, %v316_v9 }
  0xab   : > { %318 = vrot.lane.b32.xlu0 %v317_v10, %s795_s18  ;;  %s461_s18 = sshll.u32 %s457_s11, 4  ;;  %s462_s18 = int_to_ptr.hbm [resolvable:$true] %s461_s18 }
 0x11d   : > { %v319_v11 = vpop.permute.xlu0 %318 }
 0x11e   : > { %v321_v12 = vsel %vm320_vm4, %v319_v11, 0.0 }
 0x11f   : > { %v322_v13 = vadd.f32 %v321_v12, %v317_v10 }
 0x121   : > { %323 = vrot.lane.b32.xlu1 %v322_v13, %s796_s19  ;;  %s449_s19 = scalar_lea.sflag [#allocation5], %s274_s15 }
 0x193   : > { %v324_v14 = vpop.permute.xlu1 %323 }
 0x194   : > { %v326_v15 = vsel %vm325_vm5, %v324_v14, 0.0 }
 0x195   : > { %v327_v16 = vadd.f32 %v326_v15, %v322_v13 }
 0x197   : > { %328 = vrot.lane.b32.xlu1 %v327_v16, %s797_s0  ;;  %s705_s0 = sshra.s32 %s462_s18, 4  ;;  %s706_s0 = int_to_ptr.hbm [resolvable:$true] %s705_s0 }
 0x198   : > { %p712_p8 = scmp.lt.s32.totalorder %s706_s0, %s1010_s5 }
 0x19f   : > { %351 = vperm.xlu1 %674, %v931_v23  }
 0x209   : > { %v329_v17 = vpop.permute.xlu1 %328 }
 0x20a   : > { %v331_v18 = vsel %vm330_vm6, %v329_v17, 0.0 }
 0x20b   : > { %v332_v19 = vadd.f32 %v331_v18, %v327_v16 }
 0x20d   : > { %333 = vrot.lane.b32.xlu2 %v332_v19, %s798_s28  ;;  %s707_s28 = scalar_lea.hbm %s706_s0, 1 }
 0x20e   : > { %p708_p5 = scmp.ne.s32.totalorder %s706_s0, %s707_s28 }
 0x210   : > { %p709_p6 = pnand %p708_p5, %p886_p3 }
 0x211   : > { %v352_v33 = vpop.permute.xlu1 %351 }
 0x212   : > { %v354_v39 = vperm.slane %v352_v33, 0  ;;  %p710_p7 = pneg %p709_p6 }
 0x267   : > { %v334_v20 = vpop.permute.xlu2 %333 }
 0x268   : > { %v336_v21 = vsel %vm335_vm7, %v334_v20, 0.0 }
 0x269   : > { %v337_v22 = vadd.f32 %v336_v21, %v332_v19 }
 0x26b   : > { %338 = vrot.lane.b32.xlu2 %v337_v22, %s799_s6 }
 0x294   : > { %443 = vadd.xlane.f32.xlu2 %v442_v62 }
 0x2c5   : > { %v339_v25 = vpop.permute.xlu2 %338 }
 0x2c6   : > { %v341_v26 = vsel %vm340_vm8, %v339_v25, 0.0 }
 0x2c7   : > { %v342_v27 = vadd.f32 %v341_v26, %v337_v22 }
 0x2c9   : > { %343 = vrot.lane.b32.xlu0 %v342_v27, %s801_s9  ;;  %s711_s9 = scalar_lea.hbm %s1010_s5, 2 }
 0x2ca   : > { %p713_p10 = scmp.lt.s32.totalorder %s711_s9, %s707_s28 }
 0x2cc   : > { %p714_p11 = por %p713_p10, %p712_p8 }
 0x2ce   : > { %p715_p12 = pnand %p714_p11, %p710_p7 }
 0x307   : > { %v444_v1 = vpop.xlane.xlu2 %443 }
 0x308   : > { %v445_v2 = vadd.f32 %v444_v1, %v931_v23 }
 0x30a   : > { %447 = vst.msk [vmem:[#allocation2] sm:$0x1] %vm446_vm1, %v445_v2 }
 0x33b   : > { %v344_v35 = vpop.permute.xlu0 %343 }
 0x33c   : > { %v346_v36 = vsel %vm345_vm9, %v344_v35, 0.0 }
 0x33d   : > { %v347_v38 = vadd.f32 %v346_v36, %v342_v27 }
 0x33f   : > { %v348_v41 = vsub.f32 %v347_v38, %v926_v5 }
 0x341   : > { %v355_v43 = vadd.f32 %v354_v39, %v348_v41 }
 0x343   : > { %vm576_vm10 = vcmp.lt.s32.totalorder %v355_v43, 0  ;;  %v577_v46 = vceil.f32 %v355_v43  ;;  %v578_v47 = vfloor.f32 %v355_v43 }
 0x345   : > { %v579_v49 = vsel %vm576_vm10, %v577_v46, %v578_v47 }
 0x346   : > { %v580_v50 = vcvt.f32.s32 %v579_v49 }
 0x348   : > { %v362_v53 = vperm.slane %v580_v50, 0 }
 0x34a   : > { %vm366_vm11 = vcmp.eq.s32.totalorder %v361_v51, %v362_v53  ;;  %vm365_vm12 = vcmp.eq.s32.totalorder %v360_v54, %v362_v53  ;;  %vm364_vm13 = vcmp.eq.s32.totalorder %v359_v56, %v362_v53  ;;  %vm363_vm15 = vcmp.eq.s32.totalorder %v358_v44, %v362_v53 }
 0x34b   : > { %569 = vmatpush.msk.msra.mxu0 %vm366_vm11, %v802_v58 }
 0x34d   : > { %570 = vmatpush.msk.msra.mxu0 %vm365_vm12, %v802_v58 }
 0x34f   : > { %571 = vmatpush.msk.msra.mxu0 %vm364_vm13, %v802_v58 }
 0x351   : > { %572 = vmatpush.msk.msra.mxu0 %vm363_vm15, %v802_v58 }
 0x352   : > { %573 = vmatmul.msk.f32.vlgmr.msra.gmra.mxu0 %vm376_vm14, %v375_v59 }
 0x3cf   : > { %v397_v63 = vpop.f32.mrf.mxu0 }
 0x3d0   : > { %v400_v0 = vmul.f32 %v926_v5, %v397_v63 }
 0x3d2   : > { %433 = vmatmul.f32.vlgmr.msra.gmra.mxu1 %v400_v0 }
 0x44f   : > { %v434_v4 = vpop.f32.mrf.mxu1 }
 0x450   : > { %v438_v6 = vadd.f32 %v437_v3, %v434_v4 }
 0x452   : > { %440 = vst.msk [vmem:[%s921_s12] sm:$0x1] %vm439_vm2, %v438_v6 }
 0x453   : > { %718 = shalt.err (!%p715_p12)
}
 0x454   : > { %585 = dma.vmem_to_hbm [thread:$0]  (%p886_p3), %s460_s23, 16, %s462_s18, %s449_s19  }
 0x455 PF: > { %p597_p13 = scmp.ge.s32.totalorder %s789_s27, 2  ;;  %s473_s15 = sand.u32 1, %s761_s20  }
 0x456   : > { %s474_s12 = scalar_lea.sflag [#allocation5], %s473_s15 }
 0x457   : > { %p592_p0 = pnand %p597_p13, %p896_p9 }
 0x459   : > { %p593_p1 = pneg %p592_p0 }
 0x45b   : > { %756 = dma.done.wait (%p593_p1), %s474_s12, 16  }
 0x45c   : > { %758 = vsyncadd (%p593_p1), %s474_s12, 4294967280  ;;  %s20_s27 = sadd.s32 1, %s789_s27   ;;  %s1013_s20 = smov %s765_s21 }
 0x45d   : > { %p17_p2 = scmp.ge.s32.totalorder %s20_s27, 6   ;;  %s1014_s21 = smov %s769_s22 }
 0x45e   : > { %s1015_s22 = smov %s906_s13  ;;  %s1016_s23 = smov %s781_s25 }
 0x45f   : > { %s1017_s24 = smov %s785_s26  ;;  %s1018_s25 = smov %s1021_s29 }
 0x460   : > { %s1019_s26 = smov %s1025_s30  ;;  %19 = sbr.rel (!%p17_p2) target bundleno = 8 (0x8), region = 87 }
 0x465   :  { %479 = vsyncpa [#allocation5], 1 }
 0x466   :  { %481 = vsyncpa [#allocation5 + $0x1], 1 }
 0x467   :  { %482 = vsyncpa [#allocation6], 1 }
 0x468   :  { %484 = vsyncpa [#allocation6 + $0x1], 1 }

</bundles_post_ra>
